<compile_context>
chip_gen: v6e
topology: v6e:2x2x1
jax: 0.10.0
libtpu: 0.0.40
codegen_flags: <defaults>
</compile_context>

<pallas_src>
import jax
import jax.numpy as jnp
from jax.experimental import pallas as pl
from jax.experimental.pallas import tpu as pltpu


def _imagenetx_kernel(x_ref, w1b_ref, b1b_ref, w2m_ref, b2m_ref, o_ref,
                      pooled_acc):
    """One (batch_block, hw_block) tile of the fused forward pass.

    x_ref:      (Bblk, C, HWblk)  NCHW input, spatial flattened on lanes
    w1b_ref:    (C, C2, HWblk)    pointwise-conv weight, lane-replicated
    b1b_ref:    (C2, HWblk)       conv bias, lane-replicated
    w2m_ref:    (C2, NPAD)        head weight (mask + 1/HW folded, zero-padded)
    b2m_ref:    (1, NPAD)         masked head bias, zero-padded
    o_ref:      (Bblk, NPAD)      lane-dense output slab
    pooled_acc: VMEM (Bblk, C2) f32 scratch -- spatial-sum accumulator
    """
    hw_i = pl.program_id(1)

    x = x_ref[...]                            # (Bblk, C, HWblk)
    Bblk, C, HWblk = x.shape
    C2 = w2m_ref.shape[0]

    # 1x1 conv as C rank-1 VPU FMAs.  Accumulator starts at the bias, so no
    # separate (Bblk, C2, HWblk) bias-add pass is needed.  K=C is tiny, so
    # keep this off the MXU; only the head below uses the MXU.
    acc = jnp.broadcast_to(b1b_ref[...], (Bblk, C2, HWblk))
    for c in range(C):                        # static, unrolled (C is tiny)
        acc = acc + w1b_ref[c] * x[:, c:c + 1, :]   # lane-dense FMA
    h = jnp.maximum(acc, 0.0)                 # ReLU

    # Partial global-average-pool over this spatial tile (the 1/HW factor is
    # folded into the head weights, so a lane sum is enough here).
    partial = jnp.sum(h, axis=-1)             # (Bblk, C2)

    @pl.when(hw_i == 0)
    def _():
        pooled_acc[...] = jnp.zeros_like(pooled_acc)

    pooled_acc[...] += partial

    # Masked classifier head, written once per batch block on the last
    # spatial tile.
    @pl.when(hw_i == pl.num_programs(1) - 1)
    def _():
        o_ref[...] = (
            jnp.dot(pooled_acc[...], w2m_ref[...],
                    preferred_element_type=jnp.float32)
            + b2m_ref[...]
        )


def _choose_hw_block(hw, cap=2048):
    """Largest multiple-of-128 divisor of hw that is <= cap (or hw itself)."""
    if hw <= cap:
        return hw
    for blk in range(cap - cap % 128, 0, -128):
        if hw % blk == 0:
            return blk
    return hw


def _choose_batch_block(b):
    """Batch block multiple of 8 when possible (unmasked stores, v7x TCs)."""
    if b > 8 and b % 8 == 0:
        return 8
    return b


def build_imagenetx_forward(w1, b1, w2, b2, mask, x_shape):
    """Fold the ImageNet-X mask, the 1/HW mean-pool scale, the lane padding
    and the lane-replicated conv layouts into the parameters ONCE (model-init
    time), then return a jitted forward(x) closure.  The per-call path is
    free of gather / pad / reshape XLA ops."""
    B, C, H, W = x_shape
    HW = H * W
    C2 = w1.shape[1]
    NMASK = int(mask.shape[0])
    NPAD = 128 * pl.cdiv(NMASK, 128)          # lane-dense output width

    hw_blk = _choose_hw_block(HW)
    b_blk = _choose_batch_block(B)
    n_b = B // b_blk
    n_hw = HW // hw_blk

    # ---- one-time parameter folding (eager, NOT in the per-call path) ----
    # TODO(synk): a real torch nn.Conv2d 1x1 weight is (C_out, C_in, 1, 1);
    # transpose to (C_in, C_out) before this broadcast when porting weights.
    w1b = jnp.broadcast_to(w1[:, :, None], (C, C2, hw_blk))   # lane-replicated
    b1b = jnp.broadcast_to(b1[:, None], (C2, hw_blk))          # lane-replicated
    w2m = jnp.take(w2, mask, axis=1) * (1.0 / HW)              # (C2, NMASK)
    b2m = jnp.take(b2, mask, axis=0)                           # (NMASK,)
    w2m = jnp.pad(w2m, ((0, 0), (0, NPAD - NMASK)))            # (C2, NPAD)
    b2m = jnp.pad(b2m, (0, NPAD - NMASK)).reshape(1, NPAD)
    w1b, b1b, w2m, b2m = jax.block_until_ready((w1b, b1b, w2m, b2m))

    # Advisory cost + explicit VMEM budget (2x double-buffer per input block
    # plus the (Bblk, C2, HWblk) f32 activation intermediates).
    flops = 2 * B * HW * C * C2 + 2 * B * C2 * NPAD
    bytes_accessed = 4 * (B * C * HW
                          + n_b * n_hw * (w1b.size + b1b.size)
                          + n_b * (w2m.size + b2m.size)
                          + B * NPAD)
    block_bytes = 4 * (b_blk * C * hw_blk + w1b.size + b1b.size
                       + w2m.size + b2m.size + b_blk * NPAD)
    interm_bytes = 4 * 2 * b_blk * C2 * hw_blk
    vmem_limit = int(min(max(2 * block_bytes + interm_bytes + (2 << 20),
                             8 << 20),
                         48 << 20))           # stay under v7x's 64 MiB VMEM

    kernel = pl.pallas_call(
        _imagenetx_kernel,
        out_shape=jax.ShapeDtypeStruct((B, NPAD), jnp.float32),
        grid_spec=pltpu.PrefetchScalarGridSpec(
            num_scalar_prefetch=0,
            grid=(n_b, n_hw),                 # batch parallel, HW reduction last
            in_specs=[
                pl.BlockSpec((b_blk, C, hw_blk), lambda b, h: (b, 0, h)),
                pl.BlockSpec((C, C2, hw_blk), lambda b, h: (0, 0, 0)),
                pl.BlockSpec((C2, hw_blk), lambda b, h: (0, 0)),
                pl.BlockSpec((C2, NPAD), lambda b, h: (0, 0)),
                pl.BlockSpec((1, NPAD), lambda b, h: (0, 0)),
            ],
            out_specs=pl.BlockSpec((b_blk, NPAD), lambda b, h: (b, 0)),
            scratch_shapes=[pltpu.VMEM((b_blk, C2), jnp.float32)],
        ),
        compiler_params=pltpu.CompilerParams(
            dimension_semantics=("parallel", "arbitrary"),
            vmem_limit_bytes=vmem_limit),
        cost_estimate=pl.CostEstimate(
            flops=flops, transcendentals=0, bytes_accessed=bytes_accessed),
    )

    @jax.jit
    def forward(x_nchw):
        assert x_nchw.shape == (B, C, H, W)
        x_r = x_nchw.reshape(B, C, HW)        # free reshape, HW on lane axis
        out = kernel(x_r, w1b, b1b, w2m, b2m)
        return out[:, :NMASK]

    return forward


def _reference(x_nchw, w1, b1, w2, b2, mask):
    """Plain-JAX reference mirroring the PyTorch forward."""
    B, C, H, W = x_nchw.shape
    x = jnp.transpose(x_nchw, (0, 2, 3, 1)).reshape(B, H * W, C)
    h = jnp.maximum(jnp.einsum("bsc,cd->bsd", x, w1) + b1, 0.0)
    pooled = jnp.mean(h, axis=1)
    logits = pooled @ w2 + b2
    return logits[:, mask]


if __name__ == "__main__":
    # Small shapes consistent with the module: NCHW image in, masked logits out.
    B, C, H, W = 2, 4, 16, 16
    C2 = 32          # hidden channels of the synthetic backbone
    NCLS = 32        # "ImageNet" classes of the synthetic model
    NMASK = 16       # size of the ImageNet-X mask

    key = jax.random.PRNGKey(0)
    kx, k1, kb1, k2, kb2 = jax.random.split(key, 5)

    x = jax.random.normal(kx, (B, C, H, W), jnp.float32)
    w1 = jax.random.normal(k1, (C, C2), jnp.float32) * 0.1
    b1 = jax.random.normal(kb1, (C2,), jnp.float32) * 0.1
    w2 = jax.random.normal(k2, (C2, NCLS), jnp.float32) * 0.1
    b2 = jax.random.normal(kb2, (NCLS,), jnp.float32) * 0.1

    # Deterministic mask: every other class (like a fixed ImageNet-R subset).
    mask = jnp.arange(0, NCLS, 2, dtype=jnp.int32)  # length NMASK

    # One-time build (parameter folding happens here, not per call).
    forward = build_imagenetx_forward(w1, b1, w2, b2, mask, x.shape)

    out = forward(x)
    jax.block_until_ready(out)

    ref = _reference(x, w1, b1, w2, b2, mask)
    assert out.shape == (B, NMASK)
    assert jnp.allclose(out, ref, atol=1e-4, rtol=1e-4)

    print("KERNEL_OK")
</pallas_src>

<mosaic_0001>
module attributes {stable_mosaic.version = 11 : i64} {
  func.func @_imagenetx_kernel(%arg0: i32, %arg1: i32, %arg2: memref<2x4x256xf32, #tpu.memory_space<vmem>>, %arg3: memref<4x32x256xf32, #tpu.memory_space<vmem>>, %arg4: memref<32x256xf32, #tpu.memory_space<vmem>>, %arg5: memref<32x128xf32, #tpu.memory_space<vmem>>, %arg6: memref<1x128xf32, #tpu.memory_space<vmem>>, %arg7: memref<2x128xf32, #tpu.memory_space<vmem>>, %arg8: memref<2x32xf32, #tpu.memory_space<vmem>>) attributes {dimension_semantics = [#tpu.dimension_semantics<parallel>, #tpu.dimension_semantics<arbitrary>], iteration_bounds = array<i64: 1, 1>, scalar_prefetch = 0 : i64, scratch_operands = 1 : i64, tpu.core_type = #tpu.core_type<tc>, window_params = [{transform_indices = @transform_0, window_bounds = array<i64: 2, 4, 256>}, {pipeline_mode = #tpu.pipeline_mode<synchronous>, transform_indices = @transform_1, window_bounds = array<i64: 4, 32, 256>}, {pipeline_mode = #tpu.pipeline_mode<synchronous>, transform_indices = @transform_2, window_bounds = array<i64: 32, 256>}, {pipeline_mode = #tpu.pipeline_mode<synchronous>, transform_indices = @transform_3, window_bounds = array<i64: 32, 128>}, {pipeline_mode = #tpu.pipeline_mode<synchronous>, transform_indices = @transform_4, window_bounds = array<i64: 1, 128>}, {transform_indices = @transform_5, window_bounds = array<i64: 2, 128>}]} {
    %c0 = arith.constant 0 : index
    %c0_0 = arith.constant 0 : index
    %c0_1 = arith.constant 0 : index
    %0 = vector.load %arg2[%c0, %c0_0, %c0_1] : memref<2x4x256xf32, #tpu.memory_space<vmem>>, vector<2x4x256xf32>
    %c0_2 = arith.constant 0 : index
    %c0_3 = arith.constant 0 : index
    %1 = vector.load %arg4[%c0_2, %c0_3] : memref<32x256xf32, #tpu.memory_space<vmem>>, vector<32x256xf32>
    %2 = vector.shape_cast %1 : vector<32x256xf32> to vector<1x32x256xf32>
    %3 = vector.broadcast %2 : vector<1x32x256xf32> to vector<2x32x256xf32>
    %c0_4 = arith.constant 0 : index
    %c0_5 = arith.constant 0 : index
    %c0_6 = arith.constant 0 : index
    %4 = vector.load %arg3[%c0_4, %c0_5, %c0_6] : memref<4x32x256xf32, #tpu.memory_space<vmem>>, vector<1x32x256xf32>
    %5 = vector.shape_cast %4 : vector<1x32x256xf32> to vector<32x256xf32>
    %6 = vector.extract_strided_slice %0 {offsets = [0, 0, 0], sizes = [2, 1, 256], strides = [1, 1, 1]} : vector<2x4x256xf32> to vector<2x1x256xf32>
    %7 = vector.shape_cast %5 : vector<32x256xf32> to vector<1x32x256xf32>
    %8 = vector.broadcast %7 : vector<1x32x256xf32> to vector<2x32x256xf32>
    %9 = vector.broadcast %6 : vector<2x1x256xf32> to vector<2x32x256xf32>
    %10 = arith.mulf %8, %9 : vector<2x32x256xf32>
    %11 = arith.addf %3, %10 : vector<2x32x256xf32>
    %c1 = arith.constant 1 : index
    %c0_7 = arith.constant 0 : index
    %c0_8 = arith.constant 0 : index
    %12 = vector.load %arg3[%c1, %c0_7, %c0_8] : memref<4x32x256xf32, #tpu.memory_space<vmem>>, vector<1x32x256xf32>
    %13 = vector.shape_cast %12 : vector<1x32x256xf32> to vector<32x256xf32>
    %14 = vector.extract_strided_slice %0 {offsets = [0, 1, 0], sizes = [2, 1, 256], strides = [1, 1, 1]} : vector<2x4x256xf32> to vector<2x1x256xf32>
    %15 = vector.shape_cast %13 : vector<32x256xf32> to vector<1x32x256xf32>
    %16 = vector.broadcast %15 : vector<1x32x256xf32> to vector<2x32x256xf32>
    %17 = vector.broadcast %14 : vector<2x1x256xf32> to vector<2x32x256xf32>
    %18 = arith.mulf %16, %17 : vector<2x32x256xf32>
    %19 = arith.addf %11, %18 : vector<2x32x256xf32>
    %c2 = arith.constant 2 : index
    %c0_9 = arith.constant 0 : index
    %c0_10 = arith.constant 0 : index
    %20 = vector.load %arg3[%c2, %c0_9, %c0_10] : memref<4x32x256xf32, #tpu.memory_space<vmem>>, vector<1x32x256xf32>
    %21 = vector.shape_cast %20 : vector<1x32x256xf32> to vector<32x256xf32>
    %22 = vector.extract_strided_slice %0 {offsets = [0, 2, 0], sizes = [2, 1, 256], strides = [1, 1, 1]} : vector<2x4x256xf32> to vector<2x1x256xf32>
    %23 = vector.shape_cast %21 : vector<32x256xf32> to vector<1x32x256xf32>
    %24 = vector.broadcast %23 : vector<1x32x256xf32> to vector<2x32x256xf32>
    %25 = vector.broadcast %22 : vector<2x1x256xf32> to vector<2x32x256xf32>
    %26 = arith.mulf %24, %25 : vector<2x32x256xf32>
    %27 = arith.addf %19, %26 : vector<2x32x256xf32>
    %c3 = arith.constant 3 : index
    %c0_11 = arith.constant 0 : index
    %c0_12 = arith.constant 0 : index
    %28 = vector.load %arg3[%c3, %c0_11, %c0_12] : memref<4x32x256xf32, #tpu.memory_space<vmem>>, vector<1x32x256xf32>
    %29 = vector.shape_cast %28 : vector<1x32x256xf32> to vector<32x256xf32>
    %30 = vector.extract_strided_slice %0 {offsets = [0, 3, 0], sizes = [2, 1, 256], strides = [1, 1, 1]} : vector<2x4x256xf32> to vector<2x1x256xf32>
    %31 = vector.shape_cast %29 : vector<32x256xf32> to vector<1x32x256xf32>
    %32 = vector.broadcast %31 : vector<1x32x256xf32> to vector<2x32x256xf32>
    %33 = vector.broadcast %30 : vector<2x1x256xf32> to vector<2x32x256xf32>
    %34 = arith.mulf %32, %33 : vector<2x32x256xf32>
    %35 = arith.addf %27, %34 : vector<2x32x256xf32>
    %cst = arith.constant 0.000000e+00 : f32
    %36 = vector.broadcast %cst : f32 to vector<2x32x256xf32>
    %37 = arith.maximumf %35, %36 : vector<2x32x256xf32>
    %cst_13 = arith.constant dense<0.000000e+00> : vector<2x32xf32>
    %38 = vector.multi_reduction <add>, %37, %cst_13 [2] : vector<2x32x256xf32> to vector<2x32xf32>
    %c0_i32 = arith.constant 0 : i32
    %39 = arith.cmpi eq, %arg1, %c0_i32 : i32
    %40 = arith.extui %39 : i1 to i32
    %c0_i32_14 = arith.constant 0 : i32
    %41 = arith.cmpi ne, %40, %c0_i32_14 : i32
    scf.if %41 {
      %cst_21 = arith.constant 0.000000e+00 : f32
      %48 = vector.broadcast %cst_21 : f32 to vector<2x32xf32>
      %c0_22 = arith.constant 0 : index
      %c0_23 = arith.constant 0 : index
      %49 = vector.load %arg8[%c0_22, %c0_23] : memref<2x32xf32, #tpu.memory_space<vmem>>, vector<2x32xf32>
      tpu.vector_store %arg8[%c0_22, %c0_23], %48 {strides = array<i32>} : memref<2x32xf32, #tpu.memory_space<vmem>>, vector<2x32xf32>,
    } else {
    }
    %c0_15 = arith.constant 0 : index
    %c0_16 = arith.constant 0 : index
    %42 = vector.load %arg8[%c0_15, %c0_16] : memref<2x32xf32, #tpu.memory_space<vmem>>, vector<2x32xf32>
    %43 = arith.addf %42, %38 : vector<2x32xf32>
    %c0_17 = arith.constant 0 : index
    %c0_18 = arith.constant 0 : index
    %44 = vector.load %arg8[%c0_17, %c0_18] : memref<2x32xf32, #tpu.memory_space<vmem>>, vector<2x32xf32>
    tpu.vector_store %arg8[%c0_17, %c0_18], %43 {strides = array<i32>} : memref<2x32xf32, #tpu.memory_space<vmem>>, vector<2x32xf32>,
    %c0_i32_19 = arith.constant 0 : i32
    %45 = arith.cmpi eq, %arg1, %c0_i32_19 : i32
    %46 = arith.extui %45 : i1 to i32
    %c0_i32_20 = arith.constant 0 : i32
    %47 = arith.cmpi ne, %46, %c0_i32_20 : i32
    scf.if %47 {
      %c0_21 = arith.constant 0 : index
      %c0_22 = arith.constant 0 : index
      %48 = vector.load %arg8[%c0_21, %c0_22] : memref<2x32xf32, #tpu.memory_space<vmem>>, vector<2x32xf32>
      %c0_23 = arith.constant 0 : index
      %c0_24 = arith.constant 0 : index
      %49 = vector.load %arg5[%c0_23, %c0_24] : memref<32x128xf32, #tpu.memory_space<vmem>>, vector<32x128xf32>
      %cst_25 = arith.constant dense<0.000000e+00> : vector<2x128xf32>
      %50 = tpu.matmul %48, %49, %cst_25 {dimension_numbers = #tpu.dot_dimension_numbers<[1], [0], [0], [1], [0, 0, 1, 1], [], []>} : vector<2x32xf32>, vector<32x128xf32>, vector<2x128xf32> -> vector<2x128xf32>
      %c0_26 = arith.constant 0 : index
      %c0_27 = arith.constant 0 : index
      %51 = vector.load %arg6[%c0_26, %c0_27] : memref<1x128xf32, #tpu.memory_space<vmem>>, vector<1x128xf32>
      %52 = vector.broadcast %51 : vector<1x128xf32> to vector<2x128xf32>
      %53 = arith.addf %50, %52 : vector<2x128xf32>
      %c0_28 = arith.constant 0 : index
      %c0_29 = arith.constant 0 : index
      %54 = vector.load %arg7[%c0_28, %c0_29] : memref<2x128xf32, #tpu.memory_space<vmem>>, vector<2x128xf32>
      tpu.vector_store %arg7[%c0_28, %c0_29], %53 {strides = array<i32>} : memref<2x128xf32, #tpu.memory_space<vmem>>, vector<2x128xf32>,
    } else {
    }
    return
  }
  func.func @transform_0(%arg0: i32, %arg1: i32) -> (i32, i32, i32) {
    %c0_i32 = arith.constant 0 : i32
    %c0_i32_0 = arith.constant 0 : i32
    return %arg0, %c0_i32, %arg1 : i32, i32, i32
  }
  func.func @transform_1(%arg0: i32, %arg1: i32) -> (i32, i32, i32) {
    %c0_i32 = arith.constant 0 : i32
    %c0_i32_0 = arith.constant 0 : i32
    %c0_i32_1 = arith.constant 0 : i32
    %c0_i32_2 = arith.constant 0 : i32
    return %c0_i32, %c0_i32_0, %c0_i32_1 : i32, i32, i32
  }
  func.func @transform_2(%arg0: i32, %arg1: i32) -> (i32, i32) {
    %c0_i32 = arith.constant 0 : i32
    %c0_i32_0 = arith.constant 0 : i32
    %c0_i32_1 = arith.constant 0 : i32
    return %c0_i32, %c0_i32_0 : i32, i32
  }
  func.func @transform_3(%arg0: i32, %arg1: i32) -> (i32, i32) {
    %c0_i32 = arith.constant 0 : i32
    %c0_i32_0 = arith.constant 0 : i32
    %c0_i32_1 = arith.constant 0 : i32
    return %c0_i32, %c0_i32_0 : i32, i32
  }
  func.func @transform_4(%arg0: i32, %arg1: i32) -> (i32, i32) {
    %c0_i32 = arith.constant 0 : i32
    %c0_i32_0 = arith.constant 0 : i32
    %c0_i32_1 = arith.constant 0 : i32
    return %c0_i32, %c0_i32_0 : i32, i32
  }
  func.func @transform_5(%arg0: i32, %arg1: i32) -> (i32, i32) {
    %c0_i32 = arith.constant 0 : i32
    %c0_i32_0 = arith.constant 0 : i32
    return %arg0, %c0_i32 : i32, i32
  }
}

</mosaic_0001>

<bundles_post_ra>
// kernel: forward.1
= control target key start
LH: loop header
LB: loop body
LE: loop exit
PB: predicated region body
PF: predicated region fallthrough
CT: control target
= control target key end

     0   :  { %10 = vsyncpa [#allocation4], 0  ;;  %s863_s0 = inlined_call_operand.vmem [shape: f32[2,4,256], index: 0, kind: input, shape index: {}]   ;;  %s864_s1 = inlined_call_operand.hbm [shape: f32[4,32,256], index: 1, kind: input, shape index: {}]   ;;  %s865_s2 = inlined_call_operand.vmem [shape: f32[32,256], index: 2, kind: input, shape index: {}]   ;;  %s866_s3 = inlined_call_operand.vmem [shape: f32[32,128], index: 3, kind: input, shape index: {}]   ;;  %s867_s4 = inlined_call_operand.vmem [shape: f32[1,128], index: 4, kind: input, shape index: {}]   ;;  %s868_s5 = inlined_call_operand.hbm [shape: f32[2,128], index: 5, kind: output, shape index: {}]  }
   0x1   :  { %11 = vsyncpa [#allocation5], 0  ;;  %s634_s18 = smov [#allocation3]  }
   0x2   :  { %s19_s19 = sshll.u32 %s634_s18, 4  ;;  %s20_s19 = int_to_ptr.vmem [resolvable:$true] %s19_s19 }
   0x3   :  { %s598_s20 = scalar_lea.vmem %s20_s19, 4096  ;;  %p603_p1 = scmp.lt.s32.totalorder %s20_s19, %s20_s19 }
   0x4   :  { %p599_p0 = scmp.ne.s32.totalorder %s20_s19, %s598_s20  ;;  %p604_p2 = scmp.lt.s32.totalorder %s598_s20, %s598_s20 }
   0x6   :  { %p605_p3 = por %p604_p2, %p603_p1 }
   0x8   :  { %p606_p4 = pnand %p605_p3, %p599_p0 }
   0xa   :  { %609 = shalt.err (!%p606_p4)
}
   0xb   :  { %s635_s21 = smov 256   ;;  %s636_s22 = smov 16  }
   0xc   :  { %25 = dma.hbm_to_vmem [thread:$0]  %s864_s1, 4096, %s20_s19, [#allocation4], %s635_s21, %s635_s21, %s636_s22  }
   0xd   :  { %630 = dma.done.wait [#allocation4], 4096  }
   0xe   :  { %631 = vsyncadd [#allocation4], 4294963200  ;;  %v55_v0 = vlaneseq  ;;  %v36_v12 = vld [vmem:[%s863_s0 + $0x8] sm:$0xff]  ;;  %v37_v33 = vld [vmem:[%s865_s2] sm:$0xff]  ;;  %vm398_vm0 = vcmask 254976   ;;  %vm638_vm1 = vmmov 0  }
   0xf   :  { %v45_v13 = vld [vmem:[#allocation3] sm:$0xff]  ;;  %v46_v14 = vld [vmem:[#allocation3 + $0x8] sm:$0xff]  ;;  %vm420_vm2 = vcmask 130112   ;;  %vm427_vm3 = vcmask 195712   ;;  %vm434_vm4 = vcmask 261312   ;;  %vm455_vm5 = vcmask 1041409  }
  0x10   :  { %v673_v1 = vshrl.u32 %v55_v0, 7  ;;  %v675_v2 = vand.u32 127, %v55_v0  ;;  %v124_v19 = vld [vmem:[#allocation3 + $0x40] sm:$0xff]  ;;  %v125_v20 = vld [vmem:[#allocation3 + $0x48] sm:$0xff]  ;;  %vm476_vm6 = vcmask 261120   ;;  %s639_s25 = smov [#allocation6]  }
  0x11   :  { %v201_v21 = vld [vmem:[#allocation3 + $0x80] sm:$0xff]  ;;  %v202_v30 = vld [vmem:[#allocation3 + $0x88] sm:$0xff]  ;;  %s557_s26 = sshll.u32 %s639_s25, 4  ;;  %s558_s26 = int_to_ptr.vmem [resolvable:$true] %s557_s26 }
  0x12   :  { %v57_v3 = vsub.s32 0, %v673_v1  ;;  %v61_v4 = vsub.s32 4, %v673_v1  ;;  %v134_v5 = vsub.s32 1, %v673_v1  ;;  %v138_v6 = vsub.s32 5, %v673_v1  ;;  %v705_v31 = vld [vmem:[#allocation3 + $0xc0] sm:$0xff]  ;;  %v707_v32 = vld [vmem:[#allocation3 + $0xc8] sm:$0xff]  ;;  %p615_p6 = scmp.lt.s32.totalorder %s558_s26, %s558_s26 }
  0x13   :  { %v211_v7 = vsub.s32 2, %v673_v1  ;;  %v215_v8 = vsub.s32 6, %v673_v1  ;;  %v684_v9 = vsub.s32 3, %v673_v1  ;;  %v292_v10 = vsub.s32 7, %v673_v1  ;;  %v38_v34 = vld [vmem:[%s865_s2 + $0x8] sm:$0xff]  ;;  %v35_v39 = vld [vmem:[%s863_s0] sm:$0xff] }
  0x14   :  { %v689_v11 = vsub.s32 %v675_v2, %v673_v1  ;;  %v66_v15 = vrot.slane %v36_v12, %v57_v3  ;;  %v70_v16 = vrot.slane %v36_v12, %v61_v4  ;;  %v143_v17 = vrot.slane %v36_v12, %v134_v5  ;;  %s610_s27 = scalar_lea.vmem %s558_s26, 32 }
  0x15   :  { %v147_v18 = vrot.slane %v36_v12, %v138_v6  ;;  %v220_v22 = vrot.slane %v36_v12, %v211_v7  ;;  %v224_v23 = vrot.slane %v36_v12, %v215_v8  ;;  %v297_v24 = vrot.slane %v36_v12, %v684_v9  ;;  %p611_p5 = scmp.ne.s32.totalorder %s558_s26, %s610_s27  ;;  %p616_p7 = scmp.lt.s32.totalorder %s610_s27, %s610_s27 }
  0x16   :  { %v301_v25 = vrot.slane %v36_v12, %v292_v10  ;;  %v697_v26 = vrot.slane %v66_v15, %v57_v3  ;;  %v699_v27 = vrot.slane %v70_v16, %v57_v3  ;;  %v701_v28 = vrot.slane %v143_v17, %v134_v5  ;;  %v47_v12 = vld [vmem:[#allocation3 + $0x10] sm:$0xff]  ;;  %v48_v15 = vld [vmem:[#allocation3 + $0x18] sm:$0xff] }
  0x17   :  { %v703_v29 = vrot.slane %v147_v18, %v134_v5  ;;  %v715_v35 = vrot.slane %v220_v22, %v211_v7  ;;  %v717_v36 = vrot.slane %v224_v23, %v211_v7  ;;  %v720_v37 = vrot.slane %v297_v24, %v684_v9  ;;  %p617_p8 = por %p616_p7, %p615_p6 }
  0x18   :  { %v723_v38 = vrot.slane %v301_v25, %v684_v9  ;;  %v99_v40 = vmul.f32 %v697_v26, %v45_v13  ;;  %v100_v41 = vmul.f32 %v699_v27, %v46_v14  ;;  %v176_v42 = vmul.f32 %v701_v28, %v124_v19  ;;  %v126_v25 = vld [vmem:[#allocation3 + $0x50] sm:$0xff] }
  0x19   :  { %v177_v43 = vmul.f32 %v703_v29, %v125_v20  ;;  %v253_v44 = vmul.f32 %v715_v35, %v201_v21  ;;  %v254_v45 = vmul.f32 %v717_v36, %v202_v30  ;;  %v330_v46 = vmul.f32 %v720_v37, %v705_v31  ;;  %p618_p9 = pnand %p617_p8, %p611_p5 }
  0x1a   :  { %v331_v47 = vmul.f32 %v723_v38, %v707_v32  ;;  %v115_v48 = vadd.f32 %v99_v40, %v37_v33  ;;  %v116_v49 = vadd.f32 %v100_v41, %v38_v34  ;;  %v58_v50 = vrot.slane %v35_v39, %v57_v3  ;;  %v127_v41 = vld [vmem:[#allocation3 + $0x58] sm:$0xff] }
  0x1b   :  { %v62_v51 = vrot.slane %v35_v39, %v61_v4  ;;  %v135_v52 = vrot.slane %v35_v39, %v134_v5  ;;  %v139_v53 = vrot.slane %v35_v39, %v138_v6  ;;  %v212_v54 = vrot.slane %v35_v39, %v211_v7 }
  0x1c   :  { %v216_v55 = vrot.slane %v35_v39, %v215_v8  ;;  %v192_v56 = vadd.f32 %v176_v42, %v115_v48  ;;  %v193_v57 = vadd.f32 %v177_v43, %v116_v49  ;;  %v738_v58 = vrot.slane %v58_v50, %v57_v3  ;;  %v203_v42 = vld [vmem:[#allocation3 + $0x90] sm:$0xff] }
  0x1d   :  { %v740_v59 = vrot.slane %v62_v51, %v57_v3  ;;  %v742_v60 = vrot.slane %v135_v52, %v134_v5  ;;  %v744_v61 = vrot.slane %v139_v53, %v134_v5  ;;  %v746_v62 = vrot.slane %v212_v54, %v211_v7 }
  0x1e   :  { %v748_v63 = vrot.slane %v216_v55, %v211_v7  ;;  %v269_v0 = vadd.f32 %v253_v44, %v192_v56  ;;  %v270_v4 = vadd.f32 %v254_v45, %v193_v57  ;;  %v91_v6 = vmul.f32 %v738_v58, %v45_v13  ;;  %v39_v13 = vld [vmem:[%s865_s2 + $0x10] sm:$0xff] }
  0x1f   :  { %v92_v8 = vmul.f32 %v740_v59, %v46_v14  ;;  %v168_v16 = vmul.f32 %v742_v60, %v124_v19  ;;  %v169_v3 = vmul.f32 %v744_v61, %v125_v20  ;;  %v245_v17 = vmul.f32 %v746_v62, %v201_v21  ;;  %v40_v14 = vld [vmem:[%s865_s2 + $0x18] sm:$0xff] }
  0x20   :  { %v246_v5 = vmul.f32 %v748_v63, %v202_v30  ;;  %v346_v18 = vadd.f32 %v330_v46, %v269_v0  ;;  %v347_v22 = vadd.f32 %v331_v47, %v270_v4  ;;  %v107_v7 = vadd.f32 %v91_v6, %v37_v33  ;;  %v281_v47 = vld [vmem:[#allocation3 + $0xd8] sm:$0xff] }
  0x21   :  { %v108_v23 = vadd.f32 %v92_v8, %v38_v34  ;;  %v289_v19 = vrot.slane %v35_v39, %v684_v9  ;;  %v293_v20 = vrot.slane %v35_v39, %v292_v10  ;;  %v101_v21 = vmul.f32 %v697_v26, %v47_v12  ;;  %v204_v10 = vld [vmem:[#allocation3 + $0x98] sm:$0xff]  ;;  %v280_v39 = vld [vmem:[#allocation3 + $0xd0] sm:$0xff] }
  0x22   :  { %v102_v24 = vmul.f32 %v699_v27, %v48_v15  ;;  %v362_v30 = vmax.f32 %v346_v18, 0.0  ;;  %v363_v33 = vmax.f32 %v347_v22, 0.0  ;;  %v184_v34 = vadd.f32 %v168_v16, %v107_v7 }
  0x23   :  { %v185_v40 = vadd.f32 %v169_v3, %v108_v23  ;;  %v768_v43 = vrot.slane %v289_v19, %v684_v9  ;;  %v771_v44 = vrot.slane %v293_v20, %v684_v9  ;;  %v117_v45 = vadd.f32 %v101_v21, %v39_v13  ;;  %v49_v23 = vld [vmem:[#allocation3 + $0x20] sm:$0xff] }
  0x24   :  { %v118_v46 = vadd.f32 %v102_v24, %v40_v14  ;;  %v382_v48 = vadd.f32 %v363_v33, %v362_v30  ;;  %v261_v49 = vadd.f32 %v245_v17, %v184_v34  ;;  %v178_v51 = vmul.f32 %v701_v28, %v126_v25  ;;  %v50_v30 = vld [vmem:[#allocation3 + $0x28] sm:$0xff] }
  0x25   :  { %v262_v50 = vadd.f32 %v246_v5, %v185_v40  ;;  %v322_v52 = vmul.f32 %v768_v43, %v705_v31  ;;  %v323_v53 = vmul.f32 %v771_v44, %v707_v32  ;;  %v179_v54 = vmul.f32 %v703_v29, %v127_v41  ;;  %v41_v40 = vld [vmem:[%s865_s2 + $0x20] sm:$0xff] }
  0x26   :  { %v255_v9 = vmul.f32 %v715_v35, %v203_v42  ;;  %383 = vadd.xlane.f32.xlu1 %v382_v48  ;;  %v194_v55 = vadd.f32 %v178_v51, %v117_v45  ;;  %v256_v56 = vmul.f32 %v717_v36, %v204_v10  ;;  %v332_v57 = vmul.f32 %v720_v37, %v280_v39  ;;  %v206_v48 = vld [vmem:[#allocation3 + $0xa8] sm:$0xff] }
  0x27   :  { %v333_v0 = vmul.f32 %v723_v38, %v281_v47  ;;  %v338_v4 = vadd.f32 %v322_v52, %v261_v49  ;;  %v339_v6 = vadd.f32 %v323_v53, %v262_v50  ;;  %v195_v8 = vadd.f32 %v179_v54, %v118_v46  ;;  %v282_v52 = vld [vmem:[#allocation3 + $0xe0] sm:$0xff]  ;;  %v283_v53 = vld [vmem:[#allocation3 + $0xe8] sm:$0xff] }
  0x28   :  { %v93_v31 = vmul.f32 %v738_v58, %v47_v12  ;;  %v271_v16 = vadd.f32 %v255_v9, %v194_v55  ;;  %v94_v32 = vmul.f32 %v740_v59, %v48_v15  ;;  %v170_v3 = vmul.f32 %v742_v60, %v126_v25  ;;  %v128_v12 = vld [vmem:[#allocation3 + $0x60] sm:$0xff] }
  0x29   :  { %v171_v17 = vmul.f32 %v744_v61, %v127_v41  ;;  %v354_v5 = vmax.f32 %v338_v4, 0.0  ;;  %v355_v18 = vmax.f32 %v339_v6, 0.0  ;;  %v272_v22 = vadd.f32 %v256_v56, %v195_v8  ;;  %v129_v41 = vld [vmem:[#allocation3 + $0x68] sm:$0xff] }
  0x2a   :  { %v109_v7 = vadd.f32 %v93_v31, %v39_v13  ;;  %v348_v19 = vadd.f32 %v332_v57, %v271_v16  ;;  %v110_v20 = vadd.f32 %v94_v32, %v40_v14  ;;  %v247_v21 = vmul.f32 %v746_v62, %v203_v42  ;;  %v205_v13 = vld [vmem:[#allocation3 + $0xa0] sm:$0xff] }
  0x2b   :  { %v248_v24 = vmul.f32 %v748_v63, %v204_v10  ;;  %v370_v33 = vadd.f32 %v355_v18, %v354_v5  ;;  %v349_v34 = vadd.f32 %v333_v0, %v272_v22  ;;  %v324_v25 = vmul.f32 %v768_v43, %v280_v39  ;;  %v42_v42 = vld [vmem:[%s865_s2 + $0x28] sm:$0xff] }
  0x2c   :  { %v186_v15 = vadd.f32 %v170_v3, %v109_v7  ;;  %v364_v45 = vmax.f32 %v348_v19, 0.0  ;;  %v187_v46 = vadd.f32 %v171_v17, %v110_v20  ;;  %v325_v14 = vmul.f32 %v771_v44, %v281_v47 }
  0x2d   :  { %v103_v10 = vmul.f32 %v697_v26, %v49_v23  ;;  %371 = vadd.xlane.f32.xlu0 %v370_v33  ;;  %v365_v49 = vmax.f32 %v349_v34, 0.0  ;;  %v104_v50 = vmul.f32 %v699_v27, %v50_v30  ;;  %v180_v51 = vmul.f32 %v701_v28, %v128_v12  ;;  %v51_v34 = vld [vmem:[#allocation3 + $0x30] sm:$0xff] }
  0x2e   :  { %v263_v39 = vadd.f32 %v247_v21, %v186_v15  ;;  %v264_v54 = vadd.f32 %v248_v24, %v187_v46  ;;  %v181_v47 = vmul.f32 %v703_v29, %v129_v41  ;;  %v257_v55 = vmul.f32 %v715_v35, %v205_v13  ;;  %v52_v15 = vld [vmem:[#allocation3 + $0x38] sm:$0xff] }
  0x2f   :  { %v119_v9 = vadd.f32 %v103_v10, %v41_v40  ;;  %v385_v56 = vadd.f32 %v365_v49, %v364_v45  ;;  %v120_v0 = vadd.f32 %v104_v50, %v42_v42  ;;  %v258_v4 = vmul.f32 %v717_v36, %v206_v48  ;;  %v207_v49 = vld [vmem:[#allocation3 + $0xb0] sm:$0xff] }
  0x30   :  { %v340_v57 = vadd.f32 %v324_v25, %v263_v39  ;;  %v341_v6 = vadd.f32 %v325_v14, %v264_v54  ;;  %v334_v31 = vmul.f32 %v720_v37, %v282_v52  ;;  %v335_v16 = vmul.f32 %v723_v38, %v283_v53  ;;  %v130_v25 = vld [vmem:[#allocation3 + $0x70] sm:$0xff]  ;;  %v131_v14 = vld [vmem:[#allocation3 + $0x78] sm:$0xff] }
  0x31   :  { %v196_v8 = vadd.f32 %v180_v51, %v119_v9  ;;  %386 = vadd.xlane.f32.xlu1 %v385_v56  ;;  %v197_v3 = vadd.f32 %v181_v47, %v120_v0  ;;  %v95_v17 = vmul.f32 %v738_v58, %v49_v23  ;;  %v96_v5 = vmul.f32 %v740_v59, %v50_v30  ;;  %v208_v39 = vld [vmem:[#allocation3 + $0xb8] sm:$0xff]  ;;  %v284_v54 = vld [vmem:[#allocation3 + $0xf0] sm:$0xff] }
  0x32   :  { %v356_v32 = vmax.f32 %v340_v57, 0.0  ;;  %v357_v18 = vmax.f32 %v341_v6, 0.0  ;;  %v172_v7 = vmul.f32 %v742_v60, %v128_v12  ;;  %v173_v19 = vmul.f32 %v744_v61, %v129_v41  ;;  %v43_v12 = vld [vmem:[%s865_s2 + $0x30] sm:$0xff]  ;;  %v285_v56 = vld [vmem:[#allocation3 + $0xf8] sm:$0xff] }
  0x33   :  { %v273_v22 = vadd.f32 %v257_v55, %v196_v8  ;;  %v274_v20 = vadd.f32 %v258_v4, %v197_v3  ;;  %v111_v21 = vadd.f32 %v95_v17, %v41_v40  ;;  %v112_v24 = vadd.f32 %v96_v5, %v42_v42 }
  0x34   :  { %v249_v33 = vmul.f32 %v746_v62, %v205_v13  ;;  %v373_v45 = vadd.f32 %v357_v18, %v356_v32  ;;  %v250_v23 = vmul.f32 %v748_v63, %v206_v48  ;;  %v326_v30 = vmul.f32 %v768_v43, %v282_v52  ;;  %v44_v13 = vld [vmem:[%s865_s2 + $0x38] sm:$0xff] }
  0x35   :  { %v350_v46 = vadd.f32 %v334_v31, %v273_v22  ;;  %v351_v41 = vadd.f32 %v335_v16, %v274_v20  ;;  %v188_v10 = vadd.f32 %v172_v7, %v111_v21  ;;  %v189_v40 = vadd.f32 %v173_v19, %v112_v24 }
  0x36   :  { %v327_v42 = vmul.f32 %v771_v44, %v283_v53  ;;  %374 = vadd.xlane.f32.xlu0 %v373_v45  ;;  %v105_v50 = vmul.f32 %v697_v26, %v51_v34  ;;  %v106_v51 = vmul.f32 %v699_v27, %v52_v15  ;;  %v182_v52 = vmul.f32 %v701_v28, %v130_v25 }
  0x37   :  { %v366_v48 = vmax.f32 %v350_v46, 0.0  ;;  %v367_v9 = vmax.f32 %v351_v41, 0.0  ;;  %v265_v47 = vadd.f32 %v249_v33, %v188_v10  ;;  %v266_v55 = vadd.f32 %v250_v23, %v189_v40 }
  0x38   :  { %v183_v53 = vmul.f32 %v703_v29, %v131_v14  ;;  %v121_v57 = vadd.f32 %v105_v50, %v43_v12  ;;  %v122_v0 = vadd.f32 %v106_v51, %v44_v13  ;;  %v259_v4 = vmul.f32 %v715_v35, %v207_v49 }
  0x39   :  { %v260_v6 = vmul.f32 %v717_v36, %v208_v39  ;;  %v388_v8 = vadd.f32 %v367_v9, %v366_v48  ;;  %v342_v31 = vadd.f32 %v326_v30, %v265_v47  ;;  %v343_v26 = vadd.f32 %v327_v42, %v266_v55  ;;  %v468_v42 = vld [vmem:[%s866_s3 + $0x18] sm:$0xff] }
  0x3a   :  { %v336_v27 = vmul.f32 %v720_v37, %v284_v54  ;;  %v198_v16 = vadd.f32 %v182_v52, %v121_v57  ;;  %v199_v28 = vadd.f32 %v183_v53, %v122_v0  ;;  %v337_v32 = vmul.f32 %v723_v38, %v285_v56 }
  0x3b   :  { %v97_v3 = vmul.f32 %v738_v58, %v51_v34  ;;  %389 = vadd.xlane.f32.xlu1 %v388_v8  ;;  %v358_v29 = vmax.f32 %v342_v31, 0.0  ;;  %v359_v17 = vmax.f32 %v343_v26, 0.0  ;;  %v98_v5 = vmul.f32 %v740_v59, %v52_v15 }
  0x3c   :  { %v174_v35 = vmul.f32 %v742_v60, %v130_v25  ;;  %v275_v18 = vadd.f32 %v259_v4, %v198_v16  ;;  %v276_v36 = vadd.f32 %v260_v6, %v199_v28  ;;  %v175_v7 = vmul.f32 %v744_v61, %v131_v14 }
  0x3d   :  { %v113_v22 = vadd.f32 %v97_v3, %v43_v12  ;;  %v376_v19 = vadd.f32 %v359_v17, %v358_v29  ;;  %v114_v37 = vadd.f32 %v98_v5, %v44_v13  ;;  %v251_v20 = vmul.f32 %v746_v62, %v207_v49  ;;  %v467_v13 = vld [vmem:[%s866_s3 + $0x10] sm:$0xff]  ;;  %v566_v17 = vld [vmem:[%s867_s4] ss:$0 sm:$0xff] }
  0x3e   :  { %v252_v38 = vmul.f32 %v748_v63, %v208_v39  ;;  %v352_v21 = vadd.f32 %v336_v27, %v275_v18  ;;  %v353_v58 = vadd.f32 %v337_v32, %v276_v36  ;;  %v328_v33 = vmul.f32 %v768_v43, %v284_v54 }
  0x3f   :  { %v190_v24 = vadd.f32 %v174_v35, %v113_v22  ;;  %377 = vadd.xlane.f32.xlu0 %v376_v19  ;;  %v191_v59 = vadd.f32 %v175_v7, %v114_v37  ;;  %v329_v60 = vmul.f32 %v771_v44, %v285_v56  ;;  %v415_v34 = vadd.s32 4294967288, %v675_v2 }
  0x40   :  { %v368_v15 = vmax.f32 %v352_v21, 0.0  ;;  %v369_v25 = vmax.f32 %v353_v58, 0.0  ;;  %v422_v63 = vadd.s32 4294967280, %v675_v2  ;;  %v429_v44 = vadd.s32 4294967272, %v675_v2  ;;  %v465_v2 = vld [vmem:[%s866_s3] sm:$0xff] }
  0x41   :  { %v267_v61 = vadd.f32 %v251_v20, %v190_v24  ;;  %v268_v45 = vadd.f32 %v252_v38, %v191_v59  ;;  %v418_v46 = vsub.s32 %v415_v34, %v673_v1  ;;  %v637_v40 = vmov 0.0  }
  0x42   :  { %v391_v62 = vadd.f32 %v369_v25, %v368_v15  ;;  %v425_v43 = vsub.s32 %v422_v63, %v673_v1  ;;  %v432_v10 = vsub.s32 %v429_v44, %v673_v1  ;;  %399 = vst.msk [vmem:[#allocation2] sm:$0x3] %vm398_vm0, %v637_v40  ;;  %573 = vmatprep.subr.mxu0 %v637_v40  ;;  %v466_v1 = vld [vmem:[%s866_s3 + $0x8] sm:$0xff] }
  0x43   :  { %v344_v23 = vadd.f32 %v328_v33, %v267_v61  ;;  %v345_v30 = vadd.f32 %v329_v60, %v268_v45  ;;  %574 = vmatpush3.msra.mxu0 %v468_v42  ;;  %581 = vmatprep.mubr.msk.f32.mxu0 %vm638_vm1, %v637_v40 }
  0x44   :  { %392 = vadd.xlane.f32.xlu1 %v391_v62  ;;  %575 = vmatprep.subr.mxu0 %v637_v40 }
  0x45   :  { %v360_v12 = vmax.f32 %v344_v23, 0.0  ;;  %v361_v14 = vmax.f32 %v345_v30, 0.0  ;;  %576 = vmatpush3.msra.mxu0 %v467_v13 }
  0x46   :  { %577 = vmatprep.subr.mxu0 %v637_v40 }
  0x47   :  { %v379_v41 = vadd.f32 %v361_v14, %v360_v12  ;;  %578 = vmatpush3.msra.mxu0 %v466_v1 }
  0x48   :  { %579 = vmatprep.subr.mxu0 %v637_v40 }
  0x49   :  { %380 = vadd.xlane.f32.xlu0 %v379_v41  ;;  %580 = vmatpush3.msra.mxu0 %v465_v2  ;;  %v400_v28 = vld [vmem:[#allocation2] sm:$0x3] }
  0xaf   :  { %v384_v49 = vpop.xlane.xlu1 %383 }
  0xb0   :  { %v439_v50 = vrot.slane %v384_v49, %v689_v11 }
  0xb6   :  { %v372_v39 = vpop.xlane.xlu0 %371 }
  0xb7   :  { %v414_v9 = vrot.slane %v372_v39, %v689_v11 }
  0xba   :  { %v387_v48 = vpop.xlane.xlu1 %386 }
  0xbb   :  { %v443_v51 = vrot.slane %v387_v48, %v418_v46 }
  0xbd   :  { %v444_v52 = vsel %vm420_vm2, %v443_v51, %v439_v50 }
  0xbf   :  { %v375_v54 = vpop.xlane.xlu0 %374 }
  0xc0   :  { %v419_v47 = vrot.slane %v375_v54, %v418_v46 }
  0xc2   :  { %v421_v55 = vsel %vm420_vm2, %v419_v47, %v414_v9 }
  0xc4   :  { %v390_v53 = vpop.xlane.xlu1 %389 }
  0xc5   :  { %v448_v56 = vrot.slane %v390_v53, %v425_v43 }
  0xc7   :  { %v449_v57 = vsel %vm427_vm3, %v448_v56, %v444_v52 }
  0xc8   :  { %v378_v0 = vpop.xlane.xlu0 %377 }
  0xc9   :  { %v426_v4 = vrot.slane %v378_v0, %v425_v43 }
  0xcb   :  { %v428_v6 = vsel %vm427_vm3, %v426_v4, %v421_v55 }
  0xcd   :  { %v393_v8 = vpop.xlane.xlu1 %392 }
  0xce   :  { %v453_v31 = vrot.slane %v393_v8, %v432_v10 }
  0xd0   :  { %v454_v26 = vsel %vm434_vm4, %v453_v31, %v449_v57 }
  0xd2   :  { %v381_v27 = vpop.xlane.xlu0 %380 }
  0xd3   :  { %v433_v16 = vrot.slane %v381_v27, %v432_v10 }
  0xd5   :  { %v435_v32 = vsel %vm434_vm4, %v433_v16, %v428_v6 }
  0xd6   :  { %v456_v3 = vsel %vm455_vm5, %v454_v26, %v435_v32 }
  0xd7   :  { %v458_v11 = vadd.f32 %v456_v3, %v400_v28 }
  0xd9   :  { %460 = vst.msk [vmem:[#allocation2] sm:$0x3] %vm398_vm0, %v458_v11 }
  0xe0   :  { %v464_v29 = vld [vmem:[#allocation2] sm:$0x3] }
  0xe1   :  { %582 = vmatmul.mubr.msk.f32.vlgmr.msra.gmra.mxu0 %vm476_vm6, %v464_v29 }
 0x1a1   :  { %v546_v5 = vpop.f32.mrf.mxu0 }
 0x1a2   :  { %v547_v35 = vadd.f32 %v566_v17, %v546_v5 }
 0x1a3   :  { %v583_v18 = vpop.f32.mrf.mxu0 }
 0x1a4   :  { %550 = vst [vmem:[#allocation6] sm:$0x3] %v547_v35 }
 0x1a5   :  { %621 = shalt.err (!%p618_p9)
}
 0x1a6   :  { %560 = dma.vmem_to_hbm [thread:$0]  %s558_s26, 32, %s868_s5, [#allocation5]  }
 0x1a7   :  { %632 = dma.done.wait [#allocation5], 32  }
 0x1a8   :  { %633 = vsyncadd [#allocation5], 4294967264 }
 0x1a9   :  { %564 = vsyncpa [#allocation4], 1 }
 0x1aa   :  { %565 = vsyncpa [#allocation5], 1 }

</bundles_post_ra>
